<compile_context>
chip_gen: v5e
topology: v5e:2x2
jax: 0.10.0
libtpu: 0.0.40
codegen_flags: <defaults>
</compile_context>

<pallas_src>
import jax
import jax.numpy as jnp
from jax.experimental import pallas as pl
from jax.experimental.pallas import tpu as pltpu

NDIM = 32      # feature dim of the Critic input
HID = 128      # hidden width of the first block
EPS = 1e-5     # nn.LayerNorm default eps
SLOPE = 0.2    # LeakyReLU negative slope


def _round_up(n, m):
    return ((n + m - 1) // m) * m


def _layernorm(h, gamma, beta):
    # One-pass statistics: both lane reductions are independent of each other,
    # so they can issue back-to-back on the XLU.  Biased variance (PyTorch).
    n = h.shape[-1]
    s1 = jnp.sum(h, axis=-1, keepdims=True)
    s2 = jnp.sum(h * h, axis=-1, keepdims=True)
    mu = s1 * (1.0 / n)
    var = s2 * (1.0 / n) - mu * mu
    rstd = jax.lax.rsqrt(var + EPS)
    return (h - mu) * rstd * gamma + beta


def _leaky_relu(h):
    return jnp.maximum(h, SLOPE * h)


def critic_kernel(x_ref, w1_ref, ln1_ref, w2_ref, ln2_ref, w3_ref, b3_ref, out_ref):
    # x tile: (TB, NDIM) f32 in HBM/VMEM; cast to the matmul dtype in-kernel
    # (avoids a separate XLA cast/pad pass over x in the wrapper).
    x = x_ref[...].astype(w1_ref.dtype)

    # Block 1: Linear(NDIM -> HID) + LayerNorm(HID) + LeakyReLU(0.2)  (f32 math)
    ln1 = ln1_ref[...]                                 # (3, HID): bias / gamma / beta
    b1, g1, be1 = ln1[0:1], ln1[1:2], ln1[2:3]
    h = jnp.dot(x, w1_ref[...], preferred_element_type=jnp.float32) + b1
    h = _leaky_relu(_layernorm(h, g1, be1))

    # Block 2: Linear(HID -> NDIM) + LayerNorm(NDIM) + LeakyReLU(0.2)
    ln2 = ln2_ref[...]                                 # (3, NDIM)
    b2, g2, be2 = ln2[0:1], ln2[1:2], ln2[2:3]
    h = jnp.dot(h.astype(w2_ref.dtype), w2_ref[...],
                preferred_element_type=jnp.float32) + b2
    h = _leaky_relu(_layernorm(h, g2, be2))

    # Head: Linear(NDIM -> 1), computed as (1, K) @ (TB, K)^T -> (1, TB) so the
    # result is produced lane-dense (unmasked row stores, no (TB,1) column).
    w3 = w3_ref[...]                                   # (1, NDIM), PyTorch layout
    v = jax.lax.dot_general(w3, h, (((1,), (1,)), ((), ())),
                            preferred_element_type=jnp.float32)
    out_ref[...] = (v + b3_ref[0, 0]).astype(out_ref.dtype)


def _pick_tile(batch, max_tb):
    """Pick the batch tile TB (no wrapper padding needed for any choice)."""
    max_tb = max(128, (max_tb // 128) * 128)   # lane-aligned; guard tiny max_tb
    if batch <= 256:
        # Small batch: one tile equal to the full batch (block == full array,
        # so the (8,128) constraint is satisfied for any batch value).
        return batch
    if batch <= max_tb:
        # Mid-size batch: split into exactly 2 lane-aligned tiles so the
        # ("parallel",) grid axis can be sharded across both v7x TensorCores.
        return _round_up((batch + 1) // 2, 128)
    # Large batch: biggest lane-aligned tile <= max_tb; last block may be
    # partial (Pallas masks the out-of-range output lanes).
    return max_tb


def critic_forward(x, params, *, max_tb=2048, matmul_dtype=jnp.bfloat16):
    w1, ln1, w2, ln2, w3, b3 = params
    B, nd = x.shape
    assert nd == NDIM

    tb = _pick_tile(B, max_tb)
    num_tiles = pl.cdiv(B, tb)

    # Weight casts are tiny (<= 128x128); x stays f32 and is cast in-kernel.
    w1m = w1.astype(matmul_dtype)
    w2m = w2.astype(matmul_dtype)

    const = lambda shape: pl.BlockSpec(shape, lambda i: (0, 0))

    out = pl.pallas_call(
        critic_kernel,
        out_shape=jax.ShapeDtypeStruct((1, B), jnp.float32),     # lane-dense row
        grid_spec=pltpu.PrefetchScalarGridSpec(
            num_scalar_prefetch=0,
            grid=(num_tiles,),
            in_specs=[
                pl.BlockSpec((tb, NDIM), lambda i: (i, 0)),      # x tile
                const((NDIM, HID)),                              # w1  [in, out]
                const((3, HID)),                                 # b1 / gamma1 / beta1
                const((HID, NDIM)),                              # w2  [in, out]
                const((3, NDIM)),                                # b2 / gamma2 / beta2
                const((1, NDIM)),                                # w3  (PyTorch [1, ndim])
                pl.BlockSpec(memory_space=pltpu.MemorySpace.SMEM),  # b3 scalar
            ],
            out_specs=pl.BlockSpec((1, tb), lambda i: (0, i)),
        ),
        compiler_params=pltpu.CompilerParams(
            dimension_semantics=("parallel",),
            # Explicit scoped-VMEM limit: big tiles fit comfortably everywhere,
            # including v5e whose default scoped limit is only 16 MiB.
            vmem_limit_bytes=32 * 1024 * 1024,
        ),
    )(x, w1m, ln1, w2m, ln2, w3, b3)

    return out.reshape(B, 1)


def init_params(key):
    ks = jax.random.split(key, 8)
    # Linear weights stored as [in, out] (pre-transposed) except the head,
    # which keeps the PyTorch [1, ndim] row layout.
    w1 = jax.random.normal(ks[0], (NDIM, HID), jnp.float32) * 0.05
    b1 = jax.random.normal(ks[1], (HID,), jnp.float32) * 0.05
    g1 = 1.0 + 0.1 * jax.random.normal(ks[2], (HID,), jnp.float32)
    be1 = 0.1 * jax.random.normal(ks[3], (HID,), jnp.float32)
    ln1 = jnp.stack([b1, g1, be1])                     # (3, HID)

    w2 = jax.random.normal(ks[4], (HID, NDIM), jnp.float32) * 0.05
    b2 = jax.random.normal(ks[5], (NDIM,), jnp.float32) * 0.05
    g2 = 1.0 + 0.1 * jax.random.normal(ks[6], (NDIM,), jnp.float32)
    be2 = 0.1 * jax.random.normal(ks[7], (NDIM,), jnp.float32)
    ln2 = jnp.stack([b2, g2, be2])                     # (3, NDIM)

    kw3, kb3 = jax.random.split(ks[0])
    w3 = jax.random.normal(kw3, (1, NDIM), jnp.float32) * 0.05
    b3 = jax.random.normal(kb3, (1, 1), jnp.float32) * 0.05
    return (w1, ln1, w2, ln2, w3, b3)


def critic_ref(x, params):
    w1, ln1, w2, ln2, w3, b3 = params
    hp = jax.lax.Precision.HIGHEST   # true-f32 reference matmuls
    h = jnp.dot(x, w1, precision=hp) + ln1[0]
    h = _leaky_relu(_layernorm(h, ln1[1], ln1[2]))
    h = jnp.dot(h, w2, precision=hp) + ln2[0]
    h = _leaky_relu(_layernorm(h, ln2[1], ln2[2]))
    return jnp.dot(h, w3.T, precision=hp) + b3


if __name__ == "__main__":
    key = jax.random.PRNGKey(0)
    kx1, kx2, kp = jax.random.split(key, 3)
    params = init_params(kp)

    # 1) Small batch: single tile (block == full array), f32 matmul path.
    x_small = jax.random.normal(kx1, (8, NDIM), jnp.float32)
    out_f32 = jax.block_until_ready(
        critic_forward(x_small, params, matmul_dtype=jnp.float32))
    ref_small = critic_ref(x_small, params)
    assert out_f32.shape == (8, 1)
    assert jnp.allclose(out_f32, ref_small, atol=1e-3, rtol=1e-3)

    # 2) Multi-step grid with a partial final block (300 = 2*128 + 44), f32.
    x_multi = jax.random.normal(kx2, (300, NDIM), jnp.float32)
    out_multi_f32 = jax.block_until_ready(
        critic_forward(x_multi, params, max_tb=128, matmul_dtype=jnp.float32))
    ref_multi = critic_ref(x_multi, params)
    assert out_multi_f32.shape == (300, 1)
    assert jnp.allclose(out_multi_f32, ref_multi, atol=1e-3, rtol=1e-3)

    # 3) Default path: 256 < B <= max_tb -> two 256-row tiles (both v7x TCs),
    #    bf16 MXU operands with f32 accumulation.
    out_multi_bf16 = jax.block_until_ready(critic_forward(x_multi, params))
    assert out_multi_bf16.shape == (300, 1)
    assert jnp.allclose(out_multi_bf16, ref_multi, atol=3e-2, rtol=3e-2)

    print("KERNEL_OK")
</pallas_src>

<mosaic_0001>
module attributes {stable_mosaic.version = 11 : i64} {
  func.func @critic_kernel(%arg0: i32, %arg1: memref<8x32xf32, #tpu.memory_space<vmem>>, %arg2: memref<32x128xf32, #tpu.memory_space<vmem>>, %arg3: memref<3x128xf32, #tpu.memory_space<vmem>>, %arg4: memref<128x32xf32, #tpu.memory_space<vmem>>, %arg5: memref<3x32xf32, #tpu.memory_space<vmem>>, %arg6: memref<1x32xf32, #tpu.memory_space<vmem>>, %arg7: memref<1x1xf32, #tpu.memory_space<smem>>, %arg8: memref<1x8xf32, #tpu.memory_space<vmem>>) attributes {dimension_semantics = [#tpu.dimension_semantics<parallel>], iteration_bounds = array<i64: 1>, scalar_prefetch = 0 : i64, scratch_operands = 0 : i64, tpu.core_type = #tpu.core_type<tc>, window_params = [{transform_indices = @transform_0, window_bounds = array<i64: 8, 32>}, {pipeline_mode = #tpu.pipeline_mode<synchronous>, transform_indices = @transform_1, window_bounds = array<i64: 32, 128>}, {pipeline_mode = #tpu.pipeline_mode<synchronous>, transform_indices = @transform_2, window_bounds = array<i64: 3, 128>}, {pipeline_mode = #tpu.pipeline_mode<synchronous>, transform_indices = @transform_3, window_bounds = array<i64: 128, 32>}, {pipeline_mode = #tpu.pipeline_mode<synchronous>, transform_indices = @transform_4, window_bounds = array<i64: 3, 32>}, {pipeline_mode = #tpu.pipeline_mode<synchronous>, transform_indices = @transform_5, window_bounds = array<i64: 1, 32>}, {transform_indices = @transform_6, window_bounds = array<i64: 1, 1>}, {transform_indices = @transform_7, window_bounds = array<i64: 1, 8>}]} {
    %c0 = arith.constant 0 : index
    %c0_0 = arith.constant 0 : index
    %0 = vector.load %arg1[%c0, %c0_0] : memref<8x32xf32, #tpu.memory_space<vmem>>, vector<8x32xf32>
    %c0_1 = arith.constant 0 : index
    %c0_2 = arith.constant 0 : index
    %1 = vector.load %arg3[%c0_1, %c0_2] : memref<3x128xf32, #tpu.memory_space<vmem>>, vector<3x128xf32>
    %2 = vector.extract_strided_slice %1 {offsets = [0, 0], sizes = [1, 128], strides = [1, 1]} : vector<3x128xf32> to vector<1x128xf32>
    %3 = vector.extract_strided_slice %1 {offsets = [1, 0], sizes = [1, 128], strides = [1, 1]} : vector<3x128xf32> to vector<1x128xf32>
    %4 = vector.extract_strided_slice %1 {offsets = [2, 0], sizes = [1, 128], strides = [1, 1]} : vector<3x128xf32> to vector<1x128xf32>
    %c0_3 = arith.constant 0 : index
    %c0_4 = arith.constant 0 : index
    %5 = vector.load %arg2[%c0_3, %c0_4] : memref<32x128xf32, #tpu.memory_space<vmem>>, vector<32x128xf32>
    %cst = arith.constant dense<0.000000e+00> : vector<8x128xf32>
    %6 = tpu.matmul %0, %5, %cst {dimension_numbers = #tpu.dot_dimension_numbers<[1], [0], [0], [1], [0, 0, 1, 1], [], []>} : vector<8x32xf32>, vector<32x128xf32>, vector<8x128xf32> -> vector<8x128xf32>
    %7 = vector.broadcast %2 : vector<1x128xf32> to vector<8x128xf32>
    %8 = arith.addf %6, %7 : vector<8x128xf32>
    %cst_5 = arith.constant dense<0.000000e+00> : vector<8xf32>
    %9 = vector.multi_reduction <add>, %8, %cst_5 [1] : vector<8x128xf32> to vector<8xf32>
    %10 = vector.shape_cast %9 : vector<8xf32> to vector<8x1xf32>
    %11 = arith.mulf %8, %8 : vector<8x128xf32>
    %cst_6 = arith.constant dense<0.000000e+00> : vector<8xf32>
    %12 = vector.multi_reduction <add>, %11, %cst_6 [1] : vector<8x128xf32> to vector<8xf32>
    %13 = vector.shape_cast %12 : vector<8xf32> to vector<8x1xf32>
    %cst_7 = arith.constant 7.812500e-03 : f32
    %14 = vector.broadcast %cst_7 : f32 to vector<8x1xf32>
    %15 = arith.mulf %10, %14 : vector<8x1xf32>
    %cst_8 = arith.constant 7.812500e-03 : f32
    %16 = vector.broadcast %cst_8 : f32 to vector<8x1xf32>
    %17 = arith.mulf %13, %16 : vector<8x1xf32>
    %18 = arith.mulf %15, %15 : vector<8x1xf32>
    %19 = arith.subf %17, %18 : vector<8x1xf32>
    %cst_9 = arith.constant 9.99999974E-6 : f32
    %20 = vector.broadcast %cst_9 : f32 to vector<8x1xf32>
    %21 = arith.addf %19, %20 : vector<8x1xf32>
    %22 = math.rsqrt %21 : vector<8x1xf32>
    %23 = vector.broadcast %15 : vector<8x1xf32> to vector<8x128xf32>
    %24 = arith.subf %8, %23 : vector<8x128xf32>
    %25 = vector.broadcast %22 : vector<8x1xf32> to vector<8x128xf32>
    %26 = arith.mulf %24, %25 : vector<8x128xf32>
    %27 = vector.broadcast %3 : vector<1x128xf32> to vector<8x128xf32>
    %28 = arith.mulf %26, %27 : vector<8x128xf32>
    %29 = vector.broadcast %4 : vector<1x128xf32> to vector<8x128xf32>
    %30 = arith.addf %28, %29 : vector<8x128xf32>
    %cst_10 = arith.constant 2.000000e-01 : f32
    %31 = vector.broadcast %cst_10 : f32 to vector<8x128xf32>
    %32 = arith.mulf %31, %30 : vector<8x128xf32>
    %33 = arith.maximumf %30, %32 : vector<8x128xf32>
    %c0_11 = arith.constant 0 : index
    %c0_12 = arith.constant 0 : index
    %34 = vector.load %arg5[%c0_11, %c0_12] : memref<3x32xf32, #tpu.memory_space<vmem>>, vector<3x32xf32>
    %35 = vector.extract_strided_slice %34 {offsets = [0, 0], sizes = [1, 32], strides = [1, 1]} : vector<3x32xf32> to vector<1x32xf32>
    %36 = vector.extract_strided_slice %34 {offsets = [1, 0], sizes = [1, 32], strides = [1, 1]} : vector<3x32xf32> to vector<1x32xf32>
    %37 = vector.extract_strided_slice %34 {offsets = [2, 0], sizes = [1, 32], strides = [1, 1]} : vector<3x32xf32> to vector<1x32xf32>
    %c0_13 = arith.constant 0 : index
    %c0_14 = arith.constant 0 : index
    %38 = vector.load %arg4[%c0_13, %c0_14] : memref<128x32xf32, #tpu.memory_space<vmem>>, vector<128x32xf32>
    %cst_15 = arith.constant dense<0.000000e+00> : vector<8x32xf32>
    %39 = tpu.matmul %33, %38, %cst_15 {dimension_numbers = #tpu.dot_dimension_numbers<[1], [0], [0], [1], [0, 0, 1, 1], [], []>} : vector<8x128xf32>, vector<128x32xf32>, vector<8x32xf32> -> vector<8x32xf32>
    %40 = vector.broadcast %35 : vector<1x32xf32> to vector<8x32xf32>
    %41 = arith.addf %39, %40 : vector<8x32xf32>
    %cst_16 = arith.constant dense<0.000000e+00> : vector<8xf32>
    %42 = vector.multi_reduction <add>, %41, %cst_16 [1] : vector<8x32xf32> to vector<8xf32>
    %43 = vector.shape_cast %42 : vector<8xf32> to vector<8x1xf32>
    %44 = arith.mulf %41, %41 : vector<8x32xf32>
    %cst_17 = arith.constant dense<0.000000e+00> : vector<8xf32>
    %45 = vector.multi_reduction <add>, %44, %cst_17 [1] : vector<8x32xf32> to vector<8xf32>
    %46 = vector.shape_cast %45 : vector<8xf32> to vector<8x1xf32>
    %cst_18 = arith.constant 3.125000e-02 : f32
    %47 = vector.broadcast %cst_18 : f32 to vector<8x1xf32>
    %48 = arith.mulf %43, %47 : vector<8x1xf32>
    %cst_19 = arith.constant 3.125000e-02 : f32
    %49 = vector.broadcast %cst_19 : f32 to vector<8x1xf32>
    %50 = arith.mulf %46, %49 : vector<8x1xf32>
    %51 = arith.mulf %48, %48 : vector<8x1xf32>
    %52 = arith.subf %50, %51 : vector<8x1xf32>
    %cst_20 = arith.constant 9.99999974E-6 : f32
    %53 = vector.broadcast %cst_20 : f32 to vector<8x1xf32>
    %54 = arith.addf %52, %53 : vector<8x1xf32>
    %55 = math.rsqrt %54 : vector<8x1xf32>
    %56 = vector.broadcast %48 : vector<8x1xf32> to vector<8x32xf32>
    %57 = arith.subf %41, %56 : vector<8x32xf32>
    %58 = vector.broadcast %55 : vector<8x1xf32> to vector<8x32xf32>
    %59 = arith.mulf %57, %58 : vector<8x32xf32>
    %60 = vector.broadcast %36 : vector<1x32xf32> to vector<8x32xf32>
    %61 = arith.mulf %59, %60 : vector<8x32xf32>
    %62 = vector.broadcast %37 : vector<1x32xf32> to vector<8x32xf32>
    %63 = arith.addf %61, %62 : vector<8x32xf32>
    %cst_21 = arith.constant 2.000000e-01 : f32
    %64 = vector.broadcast %cst_21 : f32 to vector<8x32xf32>
    %65 = arith.mulf %64, %63 : vector<8x32xf32>
    %66 = arith.maximumf %63, %65 : vector<8x32xf32>
    %c0_22 = arith.constant 0 : index
    %c0_23 = arith.constant 0 : index
    %67 = vector.load %arg6[%c0_22, %c0_23] : memref<1x32xf32, #tpu.memory_space<vmem>>, vector<1x32xf32>
    %cst_24 = arith.constant dense<0.000000e+00> : vector<1x8xf32>
    %68 = tpu.matmul %67, %66, %cst_24 {dimension_numbers = #tpu.dot_dimension_numbers<[1], [1], [0], [0], [0, 0, 1, 0], [], []>} : vector<1x32xf32>, vector<8x32xf32>, vector<1x8xf32> -> vector<1x8xf32>
    %c0_25 = arith.constant 0 : index
    %c0_26 = arith.constant 0 : index
    %69 = memref.load %arg7[%c0_25, %c0_26] : memref<1x1xf32, #tpu.memory_space<smem>>
    %70 = vector.broadcast %69 : f32 to vector<1x8xf32>
    %71 = arith.addf %68, %70 : vector<1x8xf32>
    %c0_27 = arith.constant 0 : index
    %c0_28 = arith.constant 0 : index
    %72 = vector.load %arg8[%c0_27, %c0_28] : memref<1x8xf32, #tpu.memory_space<vmem>>, vector<1x8xf32>
    tpu.vector_store %arg8[%c0_27, %c0_28], %71 {strides = array<i32>} : memref<1x8xf32, #tpu.memory_space<vmem>>, vector<1x8xf32>,
    return
  }
  func.func @transform_0(%arg0: i32) -> (i32, i32) {
    %c0_i32 = arith.constant 0 : i32
    %c0_i32_0 = arith.constant 0 : i32
    return %arg0, %c0_i32 : i32, i32
  }
  func.func @transform_1(%arg0: i32) -> (i32, i32) {
    %c0_i32 = arith.constant 0 : i32
    %c0_i32_0 = arith.constant 0 : i32
    %c0_i32_1 = arith.constant 0 : i32
    return %c0_i32, %c0_i32_0 : i32, i32
  }
  func.func @transform_2(%arg0: i32) -> (i32, i32) {
    %c0_i32 = arith.constant 0 : i32
    %c0_i32_0 = arith.constant 0 : i32
    %c0_i32_1 = arith.constant 0 : i32
    return %c0_i32, %c0_i32_0 : i32, i32
  }
  func.func @transform_3(%arg0: i32) -> (i32, i32) {
    %c0_i32 = arith.constant 0 : i32
    %c0_i32_0 = arith.constant 0 : i32
    %c0_i32_1 = arith.constant 0 : i32
    return %c0_i32, %c0_i32_0 : i32, i32
  }
  func.func @transform_4(%arg0: i32) -> (i32, i32) {
    %c0_i32 = arith.constant 0 : i32
    %c0_i32_0 = arith.constant 0 : i32
    %c0_i32_1 = arith.constant 0 : i32
    return %c0_i32, %c0_i32_0 : i32, i32
  }
  func.func @transform_5(%arg0: i32) -> (i32, i32) {
    %c0_i32 = arith.constant 0 : i32
    %c0_i32_0 = arith.constant 0 : i32
    %c0_i32_1 = arith.constant 0 : i32
    return %c0_i32, %c0_i32_0 : i32, i32
  }
  func.func @transform_6(%arg0: i32) -> (i32, i32) {
    %c0_i32 = arith.constant 0 : i32
    %c0_i32_0 = arith.constant 0 : i32
    %c0_i32_1 = arith.constant 0 : i32
    return %c0_i32, %c0_i32_0 : i32, i32
  }
  func.func @transform_7(%arg0: i32) -> (i32, i32) {
    %c0_i32 = arith.constant 0 : i32
    %c0_i32_0 = arith.constant 0 : i32
    return %c0_i32, %arg0 : i32, i32
  }
}

</mosaic_0001>

<bundles_post_ra>
// kernel: tpu_custom_call.1
= control target key start
LH: loop header
LB: loop body
LE: loop exit
PB: predicated region body
PF: predicated region fallthrough
CT: control target
= control target key end

     0   :  { %s365_s0 = inlined_call_operand.vmem [shape: f32[8,32], index: 0, kind: input, shape index: {}]   ;;  %s366_s1 = inlined_call_operand.vmem [shape: f32[32,128], index: 1, kind: input, shape index: {}]   ;;  %s367_s2 = inlined_call_operand.vmem [shape: f32[3,128], index: 2, kind: input, shape index: {}]   ;;  %s368_s3 = inlined_call_operand.vmem [shape: f32[128,32], index: 3, kind: input, shape index: {}]   ;;  %s369_s4 = inlined_call_operand.vmem [shape: f32[3,32], index: 4, kind: input, shape index: {}]   ;;  %s370_s5 = inlined_call_operand.vmem [shape: f32[1,32], index: 5, kind: input, shape index: {}]   ;;  %s371_s6 = inlined_call_operand.<no memory space> [shape: f32[1,1], index: 6, kind: input, shape index: {}]   ;;  %s372_s7 = inlined_call_operand.hbm [shape: f32[1,8], index: 7, kind: output, shape index: {}]  }
   0x1   :  { %v33_v0 = vld [vmem:[%s366_s1 + $0x18] sm:$0xff]  ;;  %v32_v1 = vld [vmem:[%s366_s1 + $0x10] sm:$0xff]  ;;  %v31_v2 = vld [vmem:[%s366_s1 + $0x8] sm:$0xff] }
   0x2   :  { %51 = vmatpush.msra.mxu0 %v33_v0 }
   0x3   :  { %13 = vsyncpa [#allocation4], 0  ;;  %v30_v3 = vld [vmem:[%s366_s1] sm:$0xff]  ;;  %vm35_vm0 = vcmask 261120   ;;  %v103_v10 = vld [vmem:[%s368_s3 + $0x78] sm:$0xff]  ;;  %s236_s20 = smov [#allocation3]  }
   0x4   :  { %52 = vmatpush.msra.mxu0 %v32_v1  ;;  %v28_v4 = vld [vmem:[%s365_s0] sm:$0xff]  ;;  %105 = vmatpush.msra.mxu1 %v103_v10  ;;  %v102_v11 = vld [vmem:[%s368_s3 + $0x70] sm:$0xff]  ;;  %v101_v12 = vld [vmem:[%s368_s3 + $0x68] sm:$0xff]  ;;  %s191_s21 = sshll.u32 %s236_s20, 4  ;;  %s193_s24 = sshll.u32 %s372_s7, 4  ;;  %vm184_vm7 = vcmask 57344   ;;  %s192_s21 = int_to_ptr.vmem [resolvable:$true] %s191_s21  ;;  %s194_s24 = int_to_ptr.hbm [resolvable:$true] %s193_s24 }
   0x5   :  { %v296_v5 = vld [vmem:[%s367_s2] sm:$0x7]  ;;  %v99_v14 = vld [vmem:[%s368_s3 + $0x58] sm:$0xff]  ;;  %v98_v15 = vld [vmem:[%s368_s3 + $0x50] sm:$0xff] }
   0x6   :  { %53 = vmatpush.msra.mxu0 %v31_v2  ;;  %v34_v6 = vperm.slane %v296_v5, 0  ;;  %106 = vmatpush.msra.mxu1 %v102_v11  ;;  %v100_v13 = vld [vmem:[%s368_s3 + $0x60] sm:$0xff]  ;;  %v97_v16 = vld [vmem:[%s368_s3 + $0x48] sm:$0xff]  ;;  %v95_v18 = vld [vmem:[%s368_s3 + $0x38] sm:$0xff]  ;;  %v81_v39 = vperm.slane %v296_v5, 1  ;;  %v83_v43 = vperm.slane %v296_v5, 2 }
   0x7   :  { %v96_v17 = vld [vmem:[%s368_s3 + $0x40] sm:$0xff]  ;;  %v94_v19 = vld [vmem:[%s368_s3 + $0x30] sm:$0xff]  ;;  %v93_v20 = vld [vmem:[%s368_s3 + $0x28] sm:$0xff] }
   0x8   :  { %54 = vmatpush.msra.mxu0 %v30_v3  ;;  %107 = vmatpush.msra.mxu1 %v101_v12  ;;  %v92_v21 = vld [vmem:[%s368_s3 + $0x20] sm:$0xff]  ;;  %v91_v23 = vld [vmem:[%s368_s3 + $0x18] sm:$0xff]  ;;  %v90_v24 = vld [vmem:[%s368_s3 + $0x10] sm:$0xff] }
   0x9   :  { %202 = vmatmul.msk.f32.vlgmr.msra.gmra.mxu0 %vm35_vm0, %v28_v4  ;;  %v89_v26 = vld [vmem:[%s368_s3 + $0x8] sm:$0xff]  ;;  %v88_v27 = vld [vmem:[%s368_s3] sm:$0xff] }
   0xa   :  { %108 = vmatpush.msra.mxu1 %v100_v13  ;;  %v87_v48 = vld [vmem:[%s369_s4] sm:$0x7] }
   0xb   :  { %v104_v49 = vperm.slane %v87_v48, 0  ;;  %v149_v4 = vperm.slane %v87_v48, 1  ;;  %v155_v13 = vld [vmem:[%s370_s5] sm:$0x1] }
   0xc   :  { %109 = vmatpush.msra.mxu1 %v99_v14  ;;  %v157_v14 = vstv %s371_s6 }
   0xe   :  { %110 = vmatpush.msra.mxu1 %v98_v15 }
  0x10   :  { %111 = vmatpush.msra.mxu1 %v97_v16 }
  0x12   :  { %112 = vmatpush.msra.mxu1 %v96_v17 }
  0x14   :  { %113 = vmatpush.msra.mxu1 %v95_v18 }
  0x16   :  { %114 = vmatpush.msra.mxu1 %v94_v19 }
  0x18   :  { %115 = vmatpush.msra.mxu1 %v93_v20 }
  0x1a   :  { %116 = vmatpush.msra.mxu1 %v92_v21 }
  0x1c   :  { %117 = vmatpush.msra.mxu1 %v91_v23 }
  0x1e   :  { %118 = vmatpush.msra.mxu1 %v90_v24 }
  0x20   :  { %119 = vmatpush.msra.mxu1 %v89_v26 }
  0x22   :  { %120 = vmatpush.msra.mxu1 %v88_v27 }
  0x86   :  { %v56_v7 = vpop.f32.mrf.mxu0 }
  0x87   :  { %v57_v8 = vadd.f32 %v56_v7, %v34_v6 }
  0x89   :  { %59 = vadd.xlane.f32.xlu0 %v57_v8  ;;  %v61_v9 = vmul.f32 %v57_v8, %v57_v8 }
  0x91   :  { %62 = vadd.xlane.f32.xlu0 %v61_v9 }
  0xfc   :  { %v60_v22 = vpop.xlane.xlu0 %59 }
  0xfd   :  { %v64_v25 = vmul.f32 0.0078125, %v60_v22 }
  0xff   :  { %v66_v29 = vmul.f32 %v64_v25, %v64_v25  ;;  %v79_v40 = vsub.f32 %v57_v8, %v64_v25  ;;  %v151_v8 = vperm.slane %v87_v48, 2 }
 0x104   :  { %v63_v28 = vpop.xlane.xlu0 %62 }
 0x105   :  { %v65_v30 = vmul.f32 0.0078125, %v63_v28 }
 0x107   :  { %v67_v31 = vsub.f32 %v65_v30, %v66_v29 }
 0x109   :  { %v68_v32 = vadd.f32 1e-05, %v67_v31 }
 0x10b   :  { %206 = vrsqrt.f32 %v68_v32  ;;  %vm75_vm2 = vweird.f32 %v68_v32 }
 0x111   :  { %v207_v33 = vpop.eup %206 }
 0x112   :  { %v70_v34 = vmul.f32 %v207_v33, %v68_v32  ;;  %vm76_vm1 = vweird.f32 %v207_v33 }
 0x113   :  { %vm77_vm3 = vmor %vm75_vm2, %vm76_vm1 }
 0x114   :  { %v71_v35 = vmul.f32 %v207_v33, %v70_v34 }
 0x116   :  { %v72_v36 = vmul.f32 0.5, %v71_v35 }
 0x118   :  { %v73_v37 = vsub.f32 1.5, %v72_v36 }
 0x11a   :  { %v74_v38 = vmul.f32 %v207_v33, %v73_v37 }
 0x11c   :  { %v78_v41 = vsel %vm77_vm3, %v207_v33, %v74_v38 }
 0x11d   :  { %v80_v42 = vmul.f32 %v79_v40, %v78_v41 }
 0x11f   :  { %v82_v44 = vmul.f32 %v81_v39, %v80_v42 }
 0x121   :  { %v84_v45 = vadd.f32 %v83_v43, %v82_v44 }
 0x123   :  { %v85_v46 = vmul.f32 0.2, %v84_v45 }
 0x125   :  { %v86_v47 = vmax.f32 %v84_v45, %v85_v46 }
 0x127   :  { %121 = vmatmul.f32.vlgmr.msra.gmra.mxu1 %v86_v47 }
 0x1a4   :  { %v122_v50 = vpop.f32.mrf.mxu1 }
 0x1a5   :  { %v123_v51 = vadd.f32 %v122_v50, %v104_v49 }
 0x1a7   :  { %v125_v52 = vsel %vm35_vm0, %v123_v51, 0.0  ;;  %v128_v53 = vmul.f32 %v123_v51, %v123_v51 }
 0x1a8   :  { %126 = vadd.xlane.f32.xlu1 %v125_v52 }
 0x1a9   :  { %v129_v54 = vsel %vm35_vm0, %v128_v53, 0.0 }
 0x1b0   :  { %130 = vadd.xlane.f32.xlu1 %v129_v54 }
 0x21b   :  { %v127_v55 = vpop.xlane.xlu1 %126 }
 0x21c   :  { %v132_v56 = vmul.f32 0.03125, %v127_v55 }
 0x21e   :  { %v134_v58 = vmul.f32 %v132_v56, %v132_v56  ;;  %v147_v5 = vsub.f32 %v123_v51, %v132_v56 }
 0x223   :  { %v131_v57 = vpop.xlane.xlu1 %130 }
 0x224   :  { %v133_v59 = vmul.f32 0.03125, %v131_v57 }
 0x226   :  { %v135_v60 = vsub.f32 %v133_v59, %v134_v58 }
 0x228   :  { %v136_v61 = vadd.f32 1e-05, %v135_v60 }
 0x22a   :  { %208 = vrsqrt.f32 %v136_v61  ;;  %vm143_vm5 = vweird.f32 %v136_v61 }
 0x230   :  { %v209_v62 = vpop.eup %208 }
 0x231   :  { %v138_v63 = vmul.f32 %v209_v62, %v136_v61  ;;  %vm144_vm4 = vweird.f32 %v209_v62 }
 0x232   :  { %vm145_vm6 = vmor %vm143_vm5, %vm144_vm4 }
 0x233   :  { %v139_v0 = vmul.f32 %v209_v62, %v138_v63 }
 0x235   :  { %v140_v1 = vmul.f32 0.5, %v139_v0 }
 0x237   :  { %v141_v2 = vsub.f32 1.5, %v140_v1 }
 0x239   :  { %v142_v3 = vmul.f32 %v209_v62, %v141_v2 }
 0x23b   :  { %v146_v6 = vsel %vm145_vm6, %v209_v62, %v142_v3 }
 0x23c   :  { %v148_v7 = vmul.f32 %v147_v5, %v146_v6 }
 0x23e   :  { %v150_v9 = vmul.f32 %v149_v4, %v148_v7 }
 0x240   :  { %v152_v10 = vadd.f32 %v151_v8, %v150_v9 }
 0x242   :  { %v153_v11 = vmul.f32 0.2, %v152_v10 }
 0x244   :  { %v154_v12 = vmax.f32 %v152_v10, %v153_v11 }
 0x246   :  { %203 = vmatpush.xpose.msk.msra.mxu2 %vm35_vm0, %v154_v12 }
 0x249   :  { %204 = vmatmul.msk.f32.vlgmr.msra.gmra.mxu2 %vm35_vm0, %v155_v13 }
 0x2cc   :  { %v181_v15 = vpop.f32.mrf.mxu2 }
 0x2cd   :  { %v182_v16 = vadd.f32 %v181_v15, %v157_v14 }
 0x2cf   :  { %185 = vst.msk [vmem:[#allocation3] sm:$0x1] %vm184_vm7, %v182_v16 }
 0x2d0   :  { %196 = dma.vmem_to_hbm [thread:$0]  %s192_s21, 16, %s194_s24, [#allocation4]  }
 0x2d1   :  { %234 = dma.done.wait [#allocation4], 16  }
 0x2d2   :  { %235 = vsyncadd [#allocation4], 4294967280 }
 0x2d3   :  { %201 = vsyncpa [#allocation4], 1 }

</bundles_post_ra>
